<compile_context>
chip_gen: v7x
topology: tpu7x:2x2x1
jax: 0.10.0
libtpu: 0.0.40
codegen_flags: <defaults>
</compile_context>

<pallas_src>
import functools

import jax
import jax.numpy as jnp
from jax.experimental import pallas as pl
from jax.experimental.pallas import tpu as pltpu


def _round_up(x, m):
    return ((x + m - 1) // m) * m


def _cdiv(a, b):
    return -(-a // b)


def _mlp_kernel(x_ref, w1_ref, b1_ref, w2_ref, b2_ref, w3_ref, b3_ref, o_ref):
    # x streams in as f32 and is cast to bf16 on-chip (no padded bf16 copy in HBM).
    x = x_ref[...].astype(jnp.bfloat16)

    # Layer 1: Linear + ReLU  (MXU matmul w/ f32 accumulation; bias+ReLU in f32 on VPU)
    h1 = jnp.dot(x, w1_ref[...], preferred_element_type=jnp.float32) + b1_ref[...]
    h1 = jnp.maximum(h1, 0.0).astype(jnp.bfloat16)

    # Layer 2: Linear + ReLU
    h2 = jnp.dot(h1, w2_ref[...], preferred_element_type=jnp.float32) + b2_ref[...]
    h2 = jnp.maximum(h2, 0.0).astype(jnp.bfloat16)

    # Layer 3: Linear (logits, no activation)
    out = jnp.dot(h2, w3_ref[...], preferred_element_type=jnp.float32) + b3_ref[...]
    o_ref[...] = out.astype(o_ref.dtype)


def prepare_params(params, *, lane_multiple=128):
    """One-time parameter prep, hoisted out of the per-call serving path.

    Pads each layer's OUTPUT dim up to `lane_multiple` (128; use 256 on
    v6e/v7x when hidden widths are non-toy, to fill the 256x256 MXU) and
    casts weights to bf16 / biases to f32.  Zero padding keeps padded
    hidden/logit lanes exactly 0 through bias+ReLU, so they never leak.
    Contraction (K) dims are left unpadded so x can stream in unpadded.
    Returns (padded_param_dict, n_classes).
    """
    w1, b1 = params["w1"], params["b1"]
    w2, b2 = params["w2"], params["b2"]
    w3, b3 = params["w3"], params["b3"]

    n_input, n_hidden = w1.shape
    n_classes = w3.shape[1]
    h_pad = _round_up(n_hidden, lane_multiple)
    c_pad = _round_up(n_classes, lane_multiple)

    def pad2(a, rows, cols, dtype):
        return jnp.pad(a.astype(dtype),
                       ((0, rows - a.shape[0]), (0, cols - a.shape[1])))

    prepped = {
        "w1": pad2(w1, n_input, h_pad, jnp.bfloat16),
        "b1": pad2(b1, 1, h_pad, jnp.float32),
        "w2": pad2(w2, h_pad, h_pad, jnp.bfloat16),
        "b2": pad2(b2, 1, h_pad, jnp.float32),
        "w3": pad2(w3, h_pad, c_pad, jnp.bfloat16),
        "b3": pad2(b3, 1, c_pad, jnp.float32),
    }
    return prepped, n_classes


def _choose_tiling(batch, batch_tile):
    """Pick (tile_rows, num_tiles, padded_batch).

    * tiles are multiples of 16 rows (bf16 activations pack 16 sublanes/vreg)
    * batch >= 256 forces >= 2 tiles so both v7x TensorCores get work
    * the tile is re-derived from the tile count so a ragged batch (e.g. 520)
      is not rounded all the way up to a multiple of batch_tile
    """
    batch_tile = max(16, _round_up(batch_tile, 16))
    b16 = _round_up(batch, 16)
    n_tiles = _cdiv(b16, batch_tile)
    if batch >= 256:
        n_tiles = max(n_tiles, 2)
    tb = _round_up(_cdiv(b16, n_tiles), 16)
    n_tiles = _cdiv(b16, tb)
    return tb, n_tiles, tb * n_tiles


@functools.partial(jax.jit, static_argnames=("n_classes", "batch_tile", "out_dtype"))
def chatbot_mlp_forward(x, prepped, n_classes, *, batch_tile=256,
                        out_dtype=jnp.float32):
    """Fused 3-layer MLP forward as a single Pallas TPU kernel.

    x:       (batch, n_input) float32
    prepped: output of prepare_params() (lane-padded bf16 weights / f32 biases)
    returns: (batch, n_classes) logits in out_dtype
    """
    w1, b1 = prepped["w1"], prepped["b1"]
    w2, b2 = prepped["w2"], prepped["b2"]
    w3, b3 = prepped["w3"], prepped["b3"]

    batch, n_input = x.shape
    h_pad = w1.shape[1]
    c_pad = w3.shape[1]

    tb, n_tiles, b_pad = _choose_tiling(batch, batch_tile)
    if b_pad != batch:
        # Only the small row remainder is padded: no K pad, no dtype cast.
        x = jnp.pad(x, ((0, b_pad - batch), (0, 0)))

    out_itemsize = jnp.dtype(out_dtype).itemsize

    # Advisory cost estimate for XLA's scheduler.
    flops = 2 * b_pad * (n_input * h_pad + h_pad * h_pad + h_pad * c_pad)
    bytes_accessed = (x.size * x.dtype.itemsize
                      + (w1.size + w2.size + w3.size) * 2
                      + (b1.size + b2.size + b3.size) * 4
                      + b_pad * c_pad * out_itemsize)
    cost = pl.CostEstimate(flops=flops, transcendentals=0,
                           bytes_accessed=bytes_accessed)

    # Explicit VMEM budget: resident weights/biases (conservatively allow the
    # pipeline to double-buffer them) + double-buffered x/out tiles +
    # activation headroom, clamped to fit v7x's 64 MiB physical VMEM.
    resident_bytes = 2 * ((w1.size + w2.size + w3.size) * 2
                          + (b1.size + b2.size + b3.size) * 4)
    stream_bytes = 2 * tb * (n_input * 4 + c_pad * out_itemsize)
    scratch_bytes = 4 * tb * h_pad * 4
    vmem_limit = resident_bytes + stream_bytes + scratch_bytes + (2 << 20)
    vmem_limit = int(min(max(vmem_limit, 32 << 20), 60 << 20))

    # Constant index_maps => weights/biases are fetched once and stay
    # VMEM-resident across all batch tiles.
    resident = lambda shape: pl.BlockSpec(shape, lambda i: (0, 0))

    out_padded = pl.pallas_call(
        _mlp_kernel,
        out_shape=jax.ShapeDtypeStruct((b_pad, c_pad), out_dtype),
        grid=(n_tiles,),
        in_specs=[
            pl.BlockSpec((tb, n_input), lambda i: (i, 0)),  # x: pipelined over batch
            resident((n_input, h_pad)),                     # w1
            resident((1, h_pad)),                           # b1
            resident((h_pad, h_pad)),                       # w2
            resident((1, h_pad)),                           # b2
            resident((h_pad, c_pad)),                       # w3
            resident((1, c_pad)),                           # b3
        ],
        out_specs=pl.BlockSpec((tb, c_pad), lambda i: (i, 0)),
        compiler_params=pltpu.CompilerParams(
            dimension_semantics=("parallel",),
            vmem_limit_bytes=vmem_limit,
        ),
        cost_estimate=cost,
    )(x, w1, b1, w2, b2, w3, b3)

    return out_padded[:batch, :n_classes]


def init_params(key, n_input, n_hidden, n_classes):
    """Deterministic init mimicking PyTorch nn.Linear: U(-1/sqrt(fan_in), 1/sqrt(fan_in)).

    Weights stored (in, out), i.e. transposed vs. nn.Linear's (out, in) storage.
    """
    ks = jax.random.split(key, 6)

    def linear(kw, kb, fan_in, fan_out):
        bound = 1.0 / jnp.sqrt(jnp.float32(fan_in))
        w = jax.random.uniform(kw, (fan_in, fan_out), jnp.float32, -bound, bound)
        b = jax.random.uniform(kb, (1, fan_out), jnp.float32, -bound, bound)
        return w, b

    w1, b1 = linear(ks[0], ks[1], n_input, n_hidden)
    w2, b2 = linear(ks[2], ks[3], n_hidden, n_hidden)
    w3, b3 = linear(ks[4], ks[5], n_hidden, n_classes)
    return {"w1": w1, "b1": b1, "w2": w2, "b2": b2, "w3": w3, "b3": b3}


def reference_forward(x, p):
    h1 = jnp.maximum(x @ p["w1"] + p["b1"], 0.0)
    h2 = jnp.maximum(h1 @ p["w2"] + p["b2"], 0.0)
    return h2 @ p["w3"] + p["b3"]


if __name__ == "__main__":
    # Small shapes consistent with the module's forward: x is (batch, n_input).
    batch, n_input, n_hidden, n_classes = 8, 64, 32, 16

    key = jax.random.PRNGKey(0)
    k_x, k_p = jax.random.split(key)
    x = jax.random.normal(k_x, (batch, n_input), jnp.float32)
    params = init_params(k_p, n_input, n_hidden, n_classes)

    # One-time prep (pad + bf16 cast), hoisted out of the per-call serving path.
    prepped, n_cls = prepare_params(params)

    out = chatbot_mlp_forward(x, prepped, n_classes=n_cls)
    out = jax.block_until_ready(out)

    ref = reference_forward(x, params)
    assert out.shape == (batch, n_classes)
    # bf16 weights/activations with f32 accumulation vs. pure-f32 reference.
    assert jnp.allclose(out, ref, atol=2e-2, rtol=2e-2), "mismatch vs JAX reference"

    print("KERNEL_OK")
</pallas_src>

<mosaic_0001>
module attributes {stable_mosaic.version = 11 : i64} {
  func.func @_mlp_kernel(%arg0: i32, %arg1: memref<16x64xf32, #tpu.memory_space<vmem>>, %arg2: memref<64x128xbf16, #tpu.memory_space<vmem>>, %arg3: memref<1x128xf32, #tpu.memory_space<vmem>>, %arg4: memref<128x128xbf16, #tpu.memory_space<vmem>>, %arg5: memref<1x128xf32, #tpu.memory_space<vmem>>, %arg6: memref<128x128xbf16, #tpu.memory_space<vmem>>, %arg7: memref<1x128xf32, #tpu.memory_space<vmem>>, %arg8: memref<16x128xf32, #tpu.memory_space<vmem>>) attributes {dimension_semantics = [#tpu.dimension_semantics<parallel>], iteration_bounds = array<i64: 1>, scalar_prefetch = 0 : i64, scratch_operands = 0 : i64, tpu.core_type = #tpu.core_type<tc>, window_params = [{transform_indices = @transform_0, window_bounds = array<i64: 16, 64>}, {pipeline_mode = #tpu.pipeline_mode<synchronous>, transform_indices = @transform_1, window_bounds = array<i64: 64, 128>}, {pipeline_mode = #tpu.pipeline_mode<synchronous>, transform_indices = @transform_2, window_bounds = array<i64: 1, 128>}, {pipeline_mode = #tpu.pipeline_mode<synchronous>, transform_indices = @transform_3, window_bounds = array<i64: 128, 128>}, {pipeline_mode = #tpu.pipeline_mode<synchronous>, transform_indices = @transform_4, window_bounds = array<i64: 1, 128>}, {pipeline_mode = #tpu.pipeline_mode<synchronous>, transform_indices = @transform_5, window_bounds = array<i64: 128, 128>}, {pipeline_mode = #tpu.pipeline_mode<synchronous>, transform_indices = @transform_6, window_bounds = array<i64: 1, 128>}, {transform_indices = @transform_7, window_bounds = array<i64: 16, 128>}]} {
    %c0 = arith.constant 0 : index
    %c0_0 = arith.constant 0 : index
    %0 = vector.load %arg1[%c0, %c0_0] : memref<16x64xf32, #tpu.memory_space<vmem>>, vector<16x64xf32>
    %1 = arith.truncf %0 : vector<16x64xf32> to vector<16x64xbf16>
    %c0_1 = arith.constant 0 : index
    %c0_2 = arith.constant 0 : index
    %2 = vector.load %arg2[%c0_1, %c0_2] : memref<64x128xbf16, #tpu.memory_space<vmem>>, vector<64x128xbf16>
    %cst = arith.constant dense<0.000000e+00> : vector<16x128xf32>
    %3 = tpu.matmul %1, %2, %cst {dimension_numbers = #tpu.dot_dimension_numbers<[1], [0], [0], [1], [0, 0, 1, 1], [], []>} : vector<16x64xbf16>, vector<64x128xbf16>, vector<16x128xf32> -> vector<16x128xf32>
    %c0_3 = arith.constant 0 : index
    %c0_4 = arith.constant 0 : index
    %4 = vector.load %arg3[%c0_3, %c0_4] : memref<1x128xf32, #tpu.memory_space<vmem>>, vector<1x128xf32>
    %5 = vector.broadcast %4 : vector<1x128xf32> to vector<16x128xf32>
    %6 = arith.addf %3, %5 : vector<16x128xf32>
    %cst_5 = arith.constant 0.000000e+00 : f32
    %7 = vector.broadcast %cst_5 : f32 to vector<16x128xf32>
    %8 = arith.maximumf %6, %7 : vector<16x128xf32>
    %9 = arith.truncf %8 : vector<16x128xf32> to vector<16x128xbf16>
    %c0_6 = arith.constant 0 : index
    %c0_7 = arith.constant 0 : index
    %10 = vector.load %arg4[%c0_6, %c0_7] : memref<128x128xbf16, #tpu.memory_space<vmem>>, vector<128x128xbf16>
    %cst_8 = arith.constant dense<0.000000e+00> : vector<16x128xf32>
    %11 = tpu.matmul %9, %10, %cst_8 {dimension_numbers = #tpu.dot_dimension_numbers<[1], [0], [0], [1], [0, 0, 1, 1], [], []>} : vector<16x128xbf16>, vector<128x128xbf16>, vector<16x128xf32> -> vector<16x128xf32>
    %c0_9 = arith.constant 0 : index
    %c0_10 = arith.constant 0 : index
    %12 = vector.load %arg5[%c0_9, %c0_10] : memref<1x128xf32, #tpu.memory_space<vmem>>, vector<1x128xf32>
    %13 = vector.broadcast %12 : vector<1x128xf32> to vector<16x128xf32>
    %14 = arith.addf %11, %13 : vector<16x128xf32>
    %cst_11 = arith.constant 0.000000e+00 : f32
    %15 = vector.broadcast %cst_11 : f32 to vector<16x128xf32>
    %16 = arith.maximumf %14, %15 : vector<16x128xf32>
    %17 = arith.truncf %16 : vector<16x128xf32> to vector<16x128xbf16>
    %c0_12 = arith.constant 0 : index
    %c0_13 = arith.constant 0 : index
    %18 = vector.load %arg6[%c0_12, %c0_13] : memref<128x128xbf16, #tpu.memory_space<vmem>>, vector<128x128xbf16>
    %cst_14 = arith.constant dense<0.000000e+00> : vector<16x128xf32>
    %19 = tpu.matmul %17, %18, %cst_14 {dimension_numbers = #tpu.dot_dimension_numbers<[1], [0], [0], [1], [0, 0, 1, 1], [], []>} : vector<16x128xbf16>, vector<128x128xbf16>, vector<16x128xf32> -> vector<16x128xf32>
    %c0_15 = arith.constant 0 : index
    %c0_16 = arith.constant 0 : index
    %20 = vector.load %arg7[%c0_15, %c0_16] : memref<1x128xf32, #tpu.memory_space<vmem>>, vector<1x128xf32>
    %21 = vector.broadcast %20 : vector<1x128xf32> to vector<16x128xf32>
    %22 = arith.addf %19, %21 : vector<16x128xf32>
    %c0_17 = arith.constant 0 : index
    %c0_18 = arith.constant 0 : index
    %23 = vector.load %arg8[%c0_17, %c0_18] : memref<16x128xf32, #tpu.memory_space<vmem>>, vector<16x128xf32>
    tpu.vector_store %arg8[%c0_17, %c0_18], %22 {strides = array<i32>} : memref<16x128xf32, #tpu.memory_space<vmem>>, vector<16x128xf32>,
    return
  }
  func.func @transform_0(%arg0: i32) -> (i32, i32) {
    %c0_i32 = arith.constant 0 : i32
    %c0_i32_0 = arith.constant 0 : i32
    return %arg0, %c0_i32 : i32, i32
  }
  func.func @transform_1(%arg0: i32) -> (i32, i32) {
    %c0_i32 = arith.constant 0 : i32
    %c0_i32_0 = arith.constant 0 : i32
    %c0_i32_1 = arith.constant 0 : i32
    return %c0_i32, %c0_i32_0 : i32, i32
  }
  func.func @transform_2(%arg0: i32) -> (i32, i32) {
    %c0_i32 = arith.constant 0 : i32
    %c0_i32_0 = arith.constant 0 : i32
    %c0_i32_1 = arith.constant 0 : i32
    return %c0_i32, %c0_i32_0 : i32, i32
  }
  func.func @transform_3(%arg0: i32) -> (i32, i32) {
    %c0_i32 = arith.constant 0 : i32
    %c0_i32_0 = arith.constant 0 : i32
    %c0_i32_1 = arith.constant 0 : i32
    return %c0_i32, %c0_i32_0 : i32, i32
  }
  func.func @transform_4(%arg0: i32) -> (i32, i32) {
    %c0_i32 = arith.constant 0 : i32
    %c0_i32_0 = arith.constant 0 : i32
    %c0_i32_1 = arith.constant 0 : i32
    return %c0_i32, %c0_i32_0 : i32, i32
  }
  func.func @transform_5(%arg0: i32) -> (i32, i32) {
    %c0_i32 = arith.constant 0 : i32
    %c0_i32_0 = arith.constant 0 : i32
    %c0_i32_1 = arith.constant 0 : i32
    return %c0_i32, %c0_i32_0 : i32, i32
  }
  func.func @transform_6(%arg0: i32) -> (i32, i32) {
    %c0_i32 = arith.constant 0 : i32
    %c0_i32_0 = arith.constant 0 : i32
    %c0_i32_1 = arith.constant 0 : i32
    return %c0_i32, %c0_i32_0 : i32, i32
  }
  func.func @transform_7(%arg0: i32) -> (i32, i32) {
    %c0_i32 = arith.constant 0 : i32
    %c0_i32_0 = arith.constant 0 : i32
    return %arg0, %c0_i32 : i32, i32
  }
}

</mosaic_0001>

<bundles_post_ra>
// kernel: chatbot_mlp_forward.1
= control target key start
LH: loop header
LB: loop body
LE: loop exit
PB: predicated region body
PF: predicated region fallthrough
CT: control target
= control target key end

     0   :  { %12 = vsyncpa [#allocation3], 0  ;;  %s682_s0 = inlined_call_operand.vmem [shape: f32[16,64], index: 0, kind: input, shape index: {}]   ;;  %s683_s1 = inlined_call_operand.vmem [shape: bf16[64,128], index: 1, kind: input, shape index: {}]   ;;  %s684_s2 = inlined_call_operand.vmem [shape: f32[1,128], index: 2, kind: input, shape index: {}]   ;;  %s685_s3 = inlined_call_operand.hbm [shape: bf16[128,128], index: 3, kind: input, shape index: {}]   ;;  %s686_s4 = inlined_call_operand.vmem [shape: f32[1,128], index: 4, kind: input, shape index: {}]   ;;  %s687_s5 = inlined_call_operand.hbm [shape: bf16[128,128], index: 5, kind: input, shape index: {}]   ;;  %s688_s6 = inlined_call_operand.vmem [shape: f32[1,128], index: 6, kind: input, shape index: {}]   ;;  %s689_s7 = inlined_call_operand.vmem [shape: f32[16,128], index: 7, kind: output, shape index: {}]  }
   0x1   :  { %13 = vsyncpa [#allocation5], 0  ;;  %s553_s24 = smov [#allocation2]   ;;  %s505_s28 = scalar_lea.hbm %s685_s3, 1024 }
   0x2   :  { %s25_s25 = sshll.u32 %s553_s24, 4  ;;  %p506_p0 = scmp.ne.s32.totalorder %s685_s3, %s505_s28  ;;  %s26_s25 = int_to_ptr.vmem [resolvable:$true] %s25_s25 }
   0x3   :  { %p509_p1 = scmp.lt.u32.totalorder %s505_s28, %s685_s3 }
   0x5   :  { %p511_p2 = pnand %p509_p1, %p506_p0 }
   0x7   :  { %514 = shalt.err (!%p511_p2)
}
   0x8   :  { %s515_s10 = scalar_lea.vmem %s26_s25, 1024  ;;  %p520_p4 = scmp.lt.s32.totalorder %s26_s25, %s26_s25 }
   0x9   :  { %p516_p3 = scmp.ne.s32.totalorder %s26_s25, %s515_s10  ;;  %p521_p5 = scmp.lt.s32.totalorder %s515_s10, %s515_s10 }
   0xb   :  { %p522_p6 = por %p521_p5, %p520_p4 }
   0xd   :  { %p523_p7 = pnand %p522_p6, %p516_p3 }
   0xf   :  { %526 = shalt.err (!%p523_p7)
}
  0x10   :  { %s554_s11 = smov 64   ;;  %s555_s12 = smov 4  }
  0x11   :  { %31 = dma.hbm_to_vmem [thread:$0]  %s685_s3, 1024, %s26_s25, [#allocation3], %s554_s11, %s554_s11, %s555_s12  }
  0x12   :  { %s556_s15 = smov [#allocation4]   ;;  %s527_s19 = scalar_lea.hbm %s687_s5, 1024 }
  0x13   :  { %s39_s16 = sshll.u32 %s556_s15, 4  ;;  %p528_p8 = scmp.ne.s32.totalorder %s687_s5, %s527_s19  ;;  %s40_s16 = int_to_ptr.vmem [resolvable:$true] %s39_s16 }
  0x14   :  { %p531_p9 = scmp.lt.u32.totalorder %s527_s19, %s687_s5 }
  0x16   :  { %p533_p10 = pnand %p531_p9, %p528_p8 }
  0x18   :  { %536 = shalt.err (!%p533_p10)
}
  0x19   :  { %s537_s24 = scalar_lea.vmem %s40_s16, 1024  ;;  %p542_p12 = scmp.lt.s32.totalorder %s40_s16, %s40_s16 }
  0x1a   :  { %p538_p11 = scmp.ne.s32.totalorder %s40_s16, %s537_s24  ;;  %p543_p13 = scmp.lt.s32.totalorder %s537_s24, %s537_s24 }
  0x1c   :  { %p544_p0 = por %p543_p13, %p542_p12 }
  0x1e   :  { %p545_p1 = pnand %p544_p0, %p538_p11 }
  0x20   :  { %548 = shalt.err (!%p545_p1)
}
  0x21   :  { %45 = dma.hbm_to_vmem [thread:$0]  %s687_s5, 1024, %s40_s16, [#allocation5], %s554_s11, %s554_s11, %s555_s12  }
  0x22   :  { %549 = dma.done.wait [#allocation3], 1024  }
  0x23   :  { %550 = vsyncadd [#allocation3], 4294966272 }
  0x24   :  { %551 = dma.done.wait [#allocation5], 1024  }
  0x25   :  { %552 = vsyncadd [#allocation5], 4294966272  ;;  %v557_v0 = vmov 0.0   ;;  %vm558_vm0 = vmmov 0   ;;  %v485_v1 = vld [vmem:[%s683_s1] sm:$0xff]   ;;  %v486_v2 = vld [vmem:[%s683_s1 + $0x8] sm:$0xff]  }
  0x26   :  { %427 = vmatprep.subr.bf16.mxu0 %v557_v0  ;;  %435 = vmatprep.mubr.msk.bf16.mxu0 %vm558_vm0, %v557_v0  ;;  %v489_v3 = vld [vmem:[#allocation2] sm:$0xff]   ;;  %v487_v4 = vld [vmem:[%s683_s1 + $0x10] sm:$0xff]   ;;  %v490_v5 = vld [vmem:[#allocation2 + $0x8] sm:$0xff]   ;;  %vm97_vm1 = vcmask 523264  }
  0x27   :  { %439 = vmatprep.subr.bf16.mxu1 %v557_v0  ;;  %455 = vmatprep.mubr.msk.bf16.mxu1 %vm558_vm0, %v557_v0  ;;  %v488_v6 = vld [vmem:[%s683_s1 + $0x18] sm:$0xff]   ;;  %v55_v7 = vld [vmem:[%s682_s0] sm:$0xff]  ;;  %v56_v8 = vld [vmem:[%s682_s0 + $0x8] sm:$0xff] }
  0x28   :  { %428 = vmatpush3.bf16.msra.mxu0 %v485_v1  ;;  %440 = vmatpush3.bf16.msra.mxu1 %v489_v3  ;;  %v491_v9 = vld [vmem:[#allocation2 + $0x10] sm:$0xff]   ;;  %v57_v10 = vpack.c.bf16 %v56_v8, %v55_v7  ;;  %v492_v11 = vld [vmem:[#allocation2 + $0x18] sm:$0xff]   ;;  %v493_v12 = vld [vmem:[#allocation2 + $0x20] sm:$0xff]  }
  0x29   :  { %429 = vmatprep.subr.bf16.mxu0 %v557_v0  ;;  %441 = vmatprep.subr.bf16.mxu1 %v557_v0  ;;  %v494_v13 = vld [vmem:[#allocation2 + $0x28] sm:$0xff]   ;;  %v495_v14 = vld [vmem:[#allocation2 + $0x30] sm:$0xff]   ;;  %v496_v15 = vld [vmem:[#allocation2 + $0x38] sm:$0xff]  }
  0x2a   :  { %v497_v16 = vld [vmem:[#allocation4] sm:$0xff]   ;;  %v498_v17 = vld [vmem:[#allocation4 + $0x8] sm:$0xff]   ;;  %v499_v18 = vld [vmem:[#allocation4 + $0x10] sm:$0xff]  }
  0x2b   :  { %v500_v19 = vld [vmem:[#allocation4 + $0x18] sm:$0xff]   ;;  %v501_v20 = vld [vmem:[#allocation4 + $0x20] sm:$0xff]   ;;  %v502_v21 = vld [vmem:[#allocation4 + $0x28] sm:$0xff]  }
  0x2c   :  { %430 = vmatpush3.bf16.msra.mxu0 %v486_v2  ;;  %442 = vmatpush3.bf16.msra.mxu1 %v490_v5  ;;  %v380_v22 = vld [vmem:[%s684_s2] ss:$0 sm:$0xff]  ;;  %v503_v32 = vld [vmem:[#allocation4 + $0x30] sm:$0xff]   ;;  %v504_v33 = vld [vmem:[#allocation4 + $0x38] sm:$0xff]  }
  0x2d   :  { %431 = vmatprep.subr.bf16.mxu0 %v557_v0  ;;  %443 = vmatprep.subr.bf16.mxu1 %v557_v0  ;;  %v386_v34 = vld [vmem:[%s686_s4] ss:$0 sm:$0xff] }
  0x2e   :  { %v395_v44 = vld [vmem:[%s688_s6] ss:$0 sm:$0xff] }
  0x30   :  { %432 = vmatpush3.bf16.msra.mxu0 %v487_v4  ;;  %444 = vmatpush3.bf16.msra.mxu1 %v491_v9 }
  0x31   :  { %433 = vmatprep.subr.bf16.mxu0 %v557_v0  ;;  %445 = vmatprep.subr.bf16.mxu1 %v557_v0 }
  0x34   :  { %434 = vmatpush3.bf16.msra.mxu0 %v488_v6  ;;  %446 = vmatpush3.bf16.msra.mxu1 %v492_v11 }
  0x35   :  { %459 = vmatprep.subr.bf16.mxu0 %v557_v0  ;;  %447 = vmatprep.subr.bf16.mxu1 %v557_v0 }
  0x37   :  { %436 = vmatmul.mubr.msk.bf16.vlgmr.msra.gmra.mrb[0].mxu0 %vm97_vm1, %v57_v10 }
  0x38   :  { %475 = vmatprep.mubr.msk.bf16.mxu0 %vm558_vm0, %v557_v0  ;;  %448 = vmatpush3.bf16.msra.mxu1 %v493_v12 }
  0x39   :  { %449 = vmatprep.subr.bf16.mxu1 %v557_v0  ;;  %460 = vmatpush3.bf16.msra.mxu0 %v497_v16 }
  0x3a   :  { %461 = vmatprep.subr.bf16.mxu0 %v557_v0 }
  0x3c   :  { %450 = vmatpush3.bf16.msra.mxu1 %v494_v13 }
  0x3d   :  { %451 = vmatprep.subr.bf16.mxu1 %v557_v0  ;;  %462 = vmatpush3.bf16.msra.mxu0 %v498_v17 }
  0x3e   :  { %463 = vmatprep.subr.bf16.mxu0 %v557_v0 }
  0x40   :  { %452 = vmatpush3.bf16.msra.mxu1 %v495_v14 }
  0x41   :  { %453 = vmatprep.subr.bf16.mxu1 %v557_v0  ;;  %464 = vmatpush3.bf16.msra.mxu0 %v499_v18 }
  0x42   :  { %465 = vmatprep.subr.bf16.mxu0 %v557_v0 }
  0x44   :  { %454 = vmatpush3.bf16.msra.mxu1 %v496_v15 }
  0x45   :  { %466 = vmatpush3.bf16.msra.mxu0 %v500_v19 }
  0x46   :  { %467 = vmatprep.subr.bf16.mxu0 %v557_v0 }
  0x49   :  { %468 = vmatpush3.bf16.msra.mxu0 %v501_v20 }
  0x4a   :  { %469 = vmatprep.subr.bf16.mxu0 %v557_v0 }
  0x4d   :  { %470 = vmatpush3.bf16.msra.mxu0 %v502_v21 }
  0x4e   :  { %471 = vmatprep.subr.bf16.mxu0 %v557_v0 }
  0x51   :  { %472 = vmatpush3.bf16.msra.mxu0 %v503_v32 }
  0x52   :  { %473 = vmatprep.subr.bf16.mxu0 %v557_v0 }
  0x55   :  { %474 = vmatpush3.bf16.msra.mxu0 %v504_v33 }
 0x10a   :  { %v135_v23 = vpop.f32.mrb[0].mxu0 }
 0x10b   :  { %v136_v24 = vadd.f32 %v380_v22, %v135_v23  ;;  %v437_v25 = vpop.f32.mrb[1].mxu0 }
 0x10c   :  { %v138_v26 = vpop.f32.mrb[2].mxu0 }
 0x10d   :  { %v139_v27 = vadd.f32 %v380_v22, %v138_v26  ;;  %v438_v28 = vpop.f32.mrb[3].mxu0  ;;  %v142_v29 = vmax.f32 %v136_v24, 0.0 }
 0x10f   :  { %v143_v30 = vmax.f32 %v139_v27, 0.0 }
 0x111   :  { %v144_v31 = vpack.c.bf16 %v143_v30, %v142_v29 }
 0x113   :  { %456 = vmatmul.mubr.bf16.vlgmr.msra.gmra.mrb[0].mxu1 %v144_v31 }
 0x1e6   :  { %v250_v35 = vpop.f32.mrb[0].mxu1 }
 0x1e7   :  { %v251_v36 = vadd.f32 %v386_v34, %v250_v35  ;;  %v457_v37 = vpop.f32.mrb[1].mxu1 }
 0x1e8   :  { %v253_v38 = vpop.f32.mrb[2].mxu1 }
 0x1e9   :  { %v254_v39 = vadd.f32 %v386_v34, %v253_v38  ;;  %v458_v40 = vpop.f32.mrb[3].mxu1  ;;  %v257_v41 = vmax.f32 %v251_v36, 0.0 }
 0x1eb   :  { %v258_v42 = vmax.f32 %v254_v39, 0.0 }
 0x1ed   :  { %v259_v43 = vpack.c.bf16 %v258_v42, %v257_v41 }
 0x1ef   :  { %476 = vmatmul.mubr.bf16.vlgmr.msra.gmra.mrb[4].mxu0 %v259_v43 }
 0x2c2   :  { %v365_v45 = vpop.f32.mrb[4].mxu0 }
 0x2c3   :  { %v366_v46 = vadd.f32 %v395_v44, %v365_v45  ;;  %v477_v47 = vpop.f32.mrb[5].mxu0 }
 0x2c4   :  { %v368_v48 = vpop.f32.mrb[6].mxu0 }
 0x2c5   :  { %372 = vst [vmem:[%s689_s7] sm:$0xff] %v366_v46  ;;  %v369_v49 = vadd.f32 %v395_v44, %v368_v48  ;;  %v478_v50 = vpop.f32.mrb[7].mxu0 }
 0x2c7   :  { %373 = vst [vmem:[%s689_s7 + $0x8] sm:$0xff] %v369_v49 }
 0x2c8   :  { %378 = vsyncpa [#allocation3], 1 }
 0x2c9   :  { %379 = vsyncpa [#allocation5], 1 }

</bundles_post_ra>
